<compile_context>
chip_gen: v7x
topology: tpu7x:2x2x1
jax: 0.10.0
libtpu: 0.0.40
codegen_flags: <defaults>
</compile_context>

<pallas_src>
import functools
import numpy as np

import jax
import jax.numpy as jnp
from jax import lax
from jax.experimental import pallas as pl
from jax.experimental.pallas import tpu as pltpu

NEG_SLOPE = 0.01  # nn.LeakyReLU default negative_slope


def _leaky(v):
    return jnp.where(v >= 0, v, NEG_SLOPE * v)


def _pick_strip(H, W, p, Ce, target_bytes=2 << 20):
    """Largest divisor of H whose flattened strip is lane-dense (multiple of 128
    lanes) while keeping the (Ce, (strip+2p)*W) f32 scratch under ~target_bytes;
    falls back to the whole image."""
    best = None
    for s in range(1, H + 1):
        if H % s != 0 or (s * W) % 128 != 0:
            continue
        if best is None or Ce * (s + 2 * p) * W * 4 <= target_bytes:
            best = s
    return best or H


def _mobivari2_kernel(x_ref, col_ref, wexp_ref, bexp_ref, wdw_ref, bdw_ref,
                      wpw_ref, bpw_ref, o_ref, x1_ref,
                      *, W, strip, k, residual):
    p = k // 2
    stripW = strip * W

    def mm(w, a):
        # MXU matmul; weights arrive pre-cast (e.g. bf16); accumulate in f32.
        if a.dtype != w.dtype:
            a = a.astype(w.dtype)
        return jnp.dot(w, a, preferred_element_type=jnp.float32)

    xwin = x_ref[0, 0]                    # (C, winHW)  f32: strip + vertical halo rows
    wdw = wdw_ref[...]                    # (Ce, k*k)   depthwise taps (f32)
    Ce = wdw.shape[0]

    # ---- exp_conv (grouped 1x1) as ONE block-diagonal matmul + LeakyReLU -------
    x1_ref[...] = _leaky(mm(wexp_ref[...], xwin) + bexp_ref[...])     # (Ce, winHW)

    # Halo rows that fall outside the image were zero-padded in x, which yields
    # leaky(b_exp) != 0 after the conv; force them back to the zeros that the
    # depthwise 'same' padding expects. Tiny (Ce, p*W) stores, border strips only.
    if p > 0:
        s = pl.program_id(1)

        @pl.when(s == 0)
        def _():
            x1_ref[:, :p * W] = jnp.zeros((Ce, p * W), jnp.float32)

        @pl.when(s == pl.num_programs(1) - 1)
        def _():
            x1_ref[:, (strip + p) * W:] = jnp.zeros((Ce, p * W), jnp.float32)

    # ---- depthwise kxk conv (stride 1, 'same') ----------------------------------
    # Hoisted left/right column-wrap masks (at most 2p small compares per step).
    col = col_ref[...]                                         # (1, stripW) int32
    left_ok = [col >= d for d in range(1, p + 1)]              # for rx = -d
    right_ok = [col < W - d for d in range(1, p + 1)]          # for rx = +d

    center = x1_ref[:, p * W:p * W + stripW]                   # (Ce, stripW)
    acc = center + bdw_ref[...]                                # inner residual + bias

    for dy in range(k):
        # one lane-slice load per kernel row; +-dx via XLU roll (wrapped lanes are
        # exactly the masked-to-zero lanes, so results are unchanged).
        row = center if dy == p else x1_ref[:, dy * W:dy * W + stripW]
        for dx in range(k):
            rx = dx - p
            if rx == 0:
                tap = row
            else:
                shifted = pltpu.roll(row, (-rx) % stripW, 1)
                mask = right_ok[rx - 1] if rx > 0 else left_ok[-rx - 1]
                tap = jnp.where(mask, shifted, 0.0)
            # TODO(synk): optional bf16 tap math on v6e/v7x (f32 kept for v5e).
            acc = acc + tap * wdw[:, dy * k + dx:dy * k + dx + 1]

    y = _leaky(acc)                                            # (Ce, stripW)

    # ---- pw_conv (dense 1x1) + outer residual, single lane-dense store ---------
    out = mm(wpw_ref[...], y) + bpw_ref[...]                   # (Cout, stripW)
    if residual:
        out = out + xwin[:, p * W:p * W + stripW]
    o_ref[0] = out


def mobivari2(x_nchw, params, *, dim, kernel_size, stride, out_dim,
              strip=None, mxu_dtype=jnp.bfloat16):
    # TODO(synk): stride > 1 not implemented (the reference forward's residual
    # only type-checks for stride == 1 anyway).
    assert stride == 1, "only stride=1 supported"
    B, C, H, W = x_nchw.shape
    assert C == dim
    HW = H * W
    k = kernel_size
    p = k // 2
    Ce = params["w_exp_t"].shape[0]
    Cout = out_dim
    residual = (dim == out_dim)

    if strip is None:
        strip = _pick_strip(H, W, p, Ce)
    assert H % strip == 0
    n_strips = H // strip
    stripW = strip * W
    winHW = (strip + 2 * p) * W
    assert stripW % 128 == 0 or stripW == HW, "strip*W must be x128 or full image"

    # Host side: zero-pad H by p and gather overlapping (strip+2p)-row windows so
    # each grid step's input block already carries its vertical halo (no
    # cross-strip dependence -> both grid axes stay "parallel"). Input has only C
    # channels, so duplicating halo rows in HBM is cheap.
    x_pad = jnp.pad(x_nchw, ((0, 0), (0, 0), (p, p), (0, 0)))
    row_idx = (jnp.arange(n_strips)[:, None] * strip
               + jnp.arange(strip + 2 * p)[None, :])            # (n_strips, strip+2p)
    x_win = jnp.moveaxis(x_pad[:, :, row_idx, :], 2, 1)         # (B, ns, C, strip+2p, W)
    x_win = x_win.reshape(B, n_strips, C, winHW)

    col_idx = (jnp.arange(stripW, dtype=jnp.int32) % W).reshape(1, stripW)

    # Host-cast MXU weights once (native bf16 MXU rate, half the weight DMA, no
    # per-step cast of resident weights). Biases / depthwise taps stay f32.
    w_exp = params["w_exp_t"].astype(mxu_dtype) if mxu_dtype else params["w_exp_t"]
    w_pw = params["w_pw"].astype(mxu_dtype) if mxu_dtype else params["w_pw"]

    # TODO(synk): for production shapes, pad C/Ce/Cout to multiples of 8 (f32) /
    # 16 (bf16) so sublanes are fully packed (demo C=Cout=4 leaves vregs half-empty).

    kernel = functools.partial(_mobivari2_kernel, W=W, strip=strip, k=k,
                               residual=residual)

    vmem_bytes = (4 * (2 * (C * winHW + Cout * stripW) + Ce * winHW)
                  + 2 * (Ce * C + Cout * Ce)
                  + 4 * (Ce * k * k + 2 * Ce + Cout + stripW))
    vmem_limit = int(min(112 << 20, max(32 << 20, 2 * vmem_bytes + (2 << 20))))

    out_flat = pl.pallas_call(
        kernel,
        out_shape=jax.ShapeDtypeStruct((B, Cout, HW), jnp.float32),
        grid_spec=pltpu.PrefetchScalarGridSpec(
            num_scalar_prefetch=0,
            grid=(B, n_strips),
            in_specs=[
                pl.BlockSpec((1, 1, C, winHW), lambda b, s: (b, s, 0, 0)),
                pl.BlockSpec((1, stripW), lambda b, s: (0, 0)),
                pl.BlockSpec(w_exp.shape, lambda b, s: (0, 0)),
                pl.BlockSpec(params["b_exp"].shape, lambda b, s: (0, 0)),
                pl.BlockSpec(params["w_dw"].shape, lambda b, s: (0, 0)),
                pl.BlockSpec(params["b_dw"].shape, lambda b, s: (0, 0)),
                pl.BlockSpec(w_pw.shape, lambda b, s: (0, 0)),
                pl.BlockSpec(params["b_pw"].shape, lambda b, s: (0, 0)),
            ],
            out_specs=pl.BlockSpec((1, Cout, stripW), lambda b, s: (b, 0, s)),
            scratch_shapes=[pltpu.VMEM((Ce, winHW), jnp.float32)],
        ),
        compiler_params=pltpu.CompilerParams(
            dimension_semantics=("parallel", "parallel"),
            vmem_limit_bytes=vmem_limit),
    )(x_win, col_idx, w_exp, params["b_exp"], params["w_dw"],
      params["b_dw"], w_pw, params["b_pw"])

    return out_flat.reshape(B, Cout, H, W)


def init_params(key, dim, kernel_size, exp_factor=1.2, expand_groups=4,
                out_dim=None):
    out_dim = out_dim or dim
    expand_dim = int(dim * exp_factor)
    expand_dim = expand_dim + (expand_groups - expand_dim % expand_groups)

    ks = jax.random.split(key, 6)
    # PyTorch-shaped conv weights (deterministic synthetic init)
    w_exp = jax.random.normal(ks[0], (expand_dim, dim // expand_groups, 1, 1),
                              jnp.float32) * 0.2
    b_exp = jax.random.normal(ks[1], (expand_dim,), jnp.float32) * 0.05
    w_dw = jax.random.normal(ks[2], (expand_dim, 1, kernel_size, kernel_size),
                             jnp.float32) * 0.2
    b_dw = jax.random.normal(ks[3], (expand_dim,), jnp.float32) * 0.05
    w_pw = jax.random.normal(ks[4], (out_dim, expand_dim, 1, 1),
                             jnp.float32) * 0.2
    b_pw = jax.random.normal(ks[5], (out_dim,), jnp.float32) * 0.05

    # Dense block-diagonal (expand_dim, dim) equivalent of the grouped 1x1 conv,
    # laid out for (Ce, C) x (C, HW) matmuls.
    cin_g = dim // expand_groups
    cout_g = expand_dim // expand_groups
    w_exp_np = np.asarray(w_exp)
    w_exp_t = np.zeros((expand_dim, dim), np.float32)
    for g in range(expand_groups):
        w_exp_t[g * cout_g:(g + 1) * cout_g,
                g * cin_g:(g + 1) * cin_g] = w_exp_np[g * cout_g:(g + 1) * cout_g,
                                                      :, 0, 0]

    params = {
        "w_exp_t": jnp.asarray(w_exp_t),                                  # (Ce, C)
        "b_exp": jnp.asarray(b_exp)[:, None],                             # (Ce, 1)
        "w_dw": jnp.asarray(w_dw).reshape(expand_dim,
                                          kernel_size * kernel_size),     # (Ce, k*k)
        "b_dw": jnp.asarray(b_dw)[:, None],                               # (Ce, 1)
        "w_pw": jnp.asarray(w_pw)[:, :, 0, 0],                            # (Cout, Ce)
        "b_pw": jnp.asarray(b_pw)[:, None],                               # (Cout, 1)
    }
    torch_like = {"w_exp": w_exp, "b_exp": b_exp, "w_dw": w_dw, "b_dw": b_dw,
                  "w_pw": w_pw, "b_pw": b_pw}
    return params, torch_like, expand_dim


def ref_forward(x, tw, dim, out_dim, kernel_size, expand_groups, expand_dim):
    """Pure-JAX (XLA conv) reference of MobiVari2.forward in NCHW."""
    p = kernel_size // 2
    dn = ('NCHW', 'OIHW', 'NCHW')
    y = lax.conv_general_dilated(x, tw["w_exp"], (1, 1), 'VALID',
                                 feature_group_count=expand_groups,
                                 dimension_numbers=dn)
    y = y + tw["b_exp"][None, :, None, None]
    x1 = jnp.where(y >= 0, y, NEG_SLOPE * y)
    d = lax.conv_general_dilated(x1, tw["w_dw"], (1, 1), [(p, p), (p, p)],
                                 feature_group_count=expand_dim,
                                 dimension_numbers=dn)
    d = d + tw["b_dw"][None, :, None, None]
    z = d + x1
    z = jnp.where(z >= 0, z, NEG_SLOPE * z)
    out = lax.conv_general_dilated(z, tw["w_pw"], (1, 1), 'VALID',
                                   dimension_numbers=dn)
    out = out + tw["b_pw"][None, :, None, None]
    return out + x if dim == out_dim else out


if __name__ == "__main__":
    dim, kernel_size, stride = 4, 3, 1
    exp_factor, expand_groups = 1.2, 4
    out_dim = dim
    B, H, W = 2, 16, 16

    key = jax.random.PRNGKey(0)
    kx, kp = jax.random.split(key)
    x = jax.random.normal(kx, (B, dim, H, W), jnp.float32)

    params, torch_like, expand_dim = init_params(
        kp, dim, kernel_size, exp_factor, expand_groups, out_dim)
    ref = ref_forward(x, torch_like, dim, out_dim, kernel_size,
                      expand_groups, expand_dim)

    # 1) multi-strip f32 (exact check of masks / roll / strip boundaries)
    # 2) auto-strip f32 (single-strip fallback path)
    # 3) multi-strip bf16 MXU (production config; looser tolerance for bf16)
    configs = [
        dict(strip=8, mxu_dtype=None, tol=1e-4),
        dict(strip=None, mxu_dtype=None, tol=1e-4),
        dict(strip=8, mxu_dtype=jnp.bfloat16, tol=5e-2),
    ]
    for cfg in configs:
        out = mobivari2(x, params, dim=dim, kernel_size=kernel_size,
                        stride=stride, out_dim=out_dim,
                        strip=cfg["strip"], mxu_dtype=cfg["mxu_dtype"])
        out = jax.block_until_ready(out)
        assert out.shape == ref.shape == (B, out_dim, H, W)
        max_err = float(jnp.max(jnp.abs(out - ref)))
        assert jnp.allclose(out, ref, atol=cfg["tol"], rtol=cfg["tol"]), (cfg, max_err)

    print("KERNEL_OK")
</pallas_src>

<mosaic_0001>
module attributes {stable_mosaic.version = 11 : i64} {
  func.func @_mobivari2_kernel(%arg0: i32, %arg1: i32, %arg2: memref<1x1x4x160xf32, #tpu.memory_space<vmem>>, %arg3: memref<1x128xi32, #tpu.memory_space<vmem>>, %arg4: memref<8x4xf32, #tpu.memory_space<vmem>>, %arg5: memref<8x1xf32, #tpu.memory_space<vmem>>, %arg6: memref<8x9xf32, #tpu.memory_space<vmem>>, %arg7: memref<8x1xf32, #tpu.memory_space<vmem>>, %arg8: memref<4x8xf32, #tpu.memory_space<vmem>>, %arg9: memref<4x1xf32, #tpu.memory_space<vmem>>, %arg10: memref<1x4x128xf32, #tpu.memory_space<vmem>>, %arg11: memref<8x160xf32, #tpu.memory_space<vmem>>) attributes {dimension_semantics = [#tpu.dimension_semantics<parallel>, #tpu.dimension_semantics<parallel>], iteration_bounds = array<i64: 2, 2>, scalar_prefetch = 0 : i64, scratch_operands = 1 : i64, tpu.core_type = #tpu.core_type<tc>, window_params = [{transform_indices = @transform_0, window_bounds = array<i64: 1, 1, 4, 160>}, {pipeline_mode = #tpu.pipeline_mode<synchronous>, transform_indices = @transform_1, window_bounds = array<i64: 1, 128>}, {pipeline_mode = #tpu.pipeline_mode<synchronous>, transform_indices = @transform_2, window_bounds = array<i64: 8, 4>}, {pipeline_mode = #tpu.pipeline_mode<synchronous>, transform_indices = @transform_3, window_bounds = array<i64: 8, 1>}, {pipeline_mode = #tpu.pipeline_mode<synchronous>, transform_indices = @transform_4, window_bounds = array<i64: 8, 9>}, {pipeline_mode = #tpu.pipeline_mode<synchronous>, transform_indices = @transform_5, window_bounds = array<i64: 8, 1>}, {pipeline_mode = #tpu.pipeline_mode<synchronous>, transform_indices = @transform_6, window_bounds = array<i64: 4, 8>}, {pipeline_mode = #tpu.pipeline_mode<synchronous>, transform_indices = @transform_7, window_bounds = array<i64: 4, 1>}, {transform_indices = @transform_8, window_bounds = array<i64: 1, 4, 128>}]} {
    %c0 = arith.constant 0 : index
    %c0_0 = arith.constant 0 : index
    %c0_1 = arith.constant 0 : index
    %c0_2 = arith.constant 0 : index
    %0 = vector.load %arg2[%c0, %c0_0, %c0_1, %c0_2] : memref<1x1x4x160xf32, #tpu.memory_space<vmem>>, vector<1x1x4x160xf32>
    %1 = vector.shape_cast %0 : vector<1x1x4x160xf32> to vector<4x160xf32>
    %c0_3 = arith.constant 0 : index
    %c0_4 = arith.constant 0 : index
    %2 = vector.load %arg6[%c0_3, %c0_4] : memref<8x9xf32, #tpu.memory_space<vmem>>, vector<8x9xf32>
    %c0_5 = arith.constant 0 : index
    %c0_6 = arith.constant 0 : index
    %3 = vector.load %arg4[%c0_5, %c0_6] : memref<8x4xf32, #tpu.memory_space<vmem>>, vector<8x4xf32>
    %cst = arith.constant dense<0.000000e+00> : vector<8x160xf32>
    %4 = tpu.matmul %3, %1, %cst {dimension_numbers = #tpu.dot_dimension_numbers<[1], [0], [0], [1], [0, 0, 1, 1], [], []>} : vector<8x4xf32>, vector<4x160xf32>, vector<8x160xf32> -> vector<8x160xf32>
    %c0_7 = arith.constant 0 : index
    %c0_8 = arith.constant 0 : index
    %5 = vector.load %arg5[%c0_7, %c0_8] : memref<8x1xf32, #tpu.memory_space<vmem>>, vector<8x1xf32>
    %6 = vector.broadcast %5 : vector<8x1xf32> to vector<8x160xf32>
    %7 = arith.addf %4, %6 : vector<8x160xf32>
    %cst_9 = arith.constant 0.000000e+00 : f32
    %8 = vector.broadcast %cst_9 : f32 to vector<8x160xf32>
    %9 = arith.cmpf oge, %7, %8 : vector<8x160xf32>
    %cst_10 = arith.constant 0.00999999977 : f32
    %10 = vector.broadcast %cst_10 : f32 to vector<8x160xf32>
    %11 = arith.mulf %10, %7 : vector<8x160xf32>
    %12 = arith.select %9, %7, %11 : vector<8x160xi1>, vector<8x160xf32>
    %c0_11 = arith.constant 0 : index
    %c0_12 = arith.constant 0 : index
    %13 = vector.load %arg11[%c0_11, %c0_12] : memref<8x160xf32, #tpu.memory_space<vmem>>, vector<8x160xf32>
    tpu.vector_store %arg11[%c0_11, %c0_12], %12 {strides = array<i32>} : memref<8x160xf32, #tpu.memory_space<vmem>>, vector<8x160xf32>,
    %c0_i32 = arith.constant 0 : i32
    %14 = arith.cmpi eq, %arg1, %c0_i32 : i32
    %15 = arith.extui %14 : i1 to i32
    %c0_i32_13 = arith.constant 0 : i32
    %16 = arith.cmpi ne, %15, %c0_i32_13 : i32
    scf.if %16 {
      %cst_45 = arith.constant 0.000000e+00 : f32
      %112 = vector.broadcast %cst_45 : f32 to vector<8x16xf32>
      %c0_46 = arith.constant 0 : index
      %c0_47 = arith.constant 0 : index
      %113 = vector.load %arg11[%c0_46, %c0_47] : memref<8x160xf32, #tpu.memory_space<vmem>>, vector<8x16xf32>
      tpu.vector_store %arg11[%c0_46, %c0_47], %112 {strides = array<i32>} : memref<8x160xf32, #tpu.memory_space<vmem>>, vector<8x16xf32>,
    } else {
    }
    %c1_i32 = arith.constant 1 : i32
    %17 = arith.cmpi eq, %arg1, %c1_i32 : i32
    %18 = arith.extui %17 : i1 to i32
    %c0_i32_14 = arith.constant 0 : i32
    %19 = arith.cmpi ne, %18, %c0_i32_14 : i32
    scf.if %19 {
      %cst_45 = arith.constant 0.000000e+00 : f32
      %112 = vector.broadcast %cst_45 : f32 to vector<8x16xf32>
      %c0_46 = arith.constant 0 : index
      %c144 = arith.constant 144 : index
      %113 = vector.load %arg11[%c0_46, %c144] : memref<8x160xf32, #tpu.memory_space<vmem>>, vector<8x16xf32>
      tpu.vector_store %arg11[%c0_46, %c144], %112 {strides = array<i32>} : memref<8x160xf32, #tpu.memory_space<vmem>>, vector<8x16xf32>,
    } else {
    }
    %c0_15 = arith.constant 0 : index
    %c0_16 = arith.constant 0 : index
    %20 = vector.load %arg3[%c0_15, %c0_16] : memref<1x128xi32, #tpu.memory_space<vmem>>, vector<1x128xi32>
    %c1_i32_17 = arith.constant 1 : i32
    %21 = vector.broadcast %c1_i32_17 : i32 to vector<1x128xi32>
    %22 = arith.cmpi sge, %20, %21 : vector<1x128xi32>
    %c15_i32 = arith.constant 15 : i32
    %23 = vector.broadcast %c15_i32 : i32 to vector<1x128xi32>
    %24 = arith.cmpi slt, %20, %23 : vector<1x128xi32>
    %c0_18 = arith.constant 0 : index
    %c16 = arith.constant 16 : index
    %25 = vector.load %arg11[%c0_18, %c16] : memref<8x160xf32, #tpu.memory_space<vmem>>, vector<8x128xf32>
    %c0_19 = arith.constant 0 : index
    %c0_20 = arith.constant 0 : index
    %26 = vector.load %arg7[%c0_19, %c0_20] : memref<8x1xf32, #tpu.memory_space<vmem>>, vector<8x1xf32>
    %27 = vector.broadcast %26 : vector<8x1xf32> to vector<8x128xf32>
    %28 = arith.addf %25, %27 : vector<8x128xf32>
    %c0_21 = arith.constant 0 : index
    %c0_22 = arith.constant 0 : index
    %29 = vector.load %arg11[%c0_21, %c0_22] : memref<8x160xf32, #tpu.memory_space<vmem>>, vector<8x128xf32>
    %c1_i32_23 = arith.constant 1 : i32
    %30 = tpu.dynamic_rotate %29 by %c1_i32_23 dim 1 : vector<8x128xf32>, i32 -> vector<8x128xf32>
    %cst_24 = arith.constant 0.000000e+00 : f32
    %31 = vector.shape_cast %22 : vector<1x128xi1> to vector<1x128xi1>
    %32 = vector.broadcast %31 : vector<1x128xi1> to vector<8x128xi1>
    %33 = vector.broadcast %cst_24 : f32 to vector<8x128xf32>
    %34 = arith.select %32, %30, %33 : vector<8x128xi1>, vector<8x128xf32>
    %35 = vector.extract_strided_slice %2 {offsets = [0, 0], sizes = [8, 1], strides = [1, 1]} : vector<8x9xf32> to vector<8x1xf32>
    %36 = vector.broadcast %35 : vector<8x1xf32> to vector<8x128xf32>
    %37 = arith.mulf %34, %36 : vector<8x128xf32>
    %38 = arith.addf %28, %37 : vector<8x128xf32>
    %39 = vector.extract_strided_slice %2 {offsets = [0, 1], sizes = [8, 1], strides = [1, 1]} : vector<8x9xf32> to vector<8x1xf32>
    %40 = vector.broadcast %39 : vector<8x1xf32> to vector<8x128xf32>
    %41 = arith.mulf %29, %40 : vector<8x128xf32>
    %42 = arith.addf %38, %41 : vector<8x128xf32>
    %c127_i32 = arith.constant 127 : i32
    %43 = tpu.dynamic_rotate %29 by %c127_i32 dim 1 : vector<8x128xf32>, i32 -> vector<8x128xf32>
    %cst_25 = arith.constant 0.000000e+00 : f32
    %44 = vector.shape_cast %24 : vector<1x128xi1> to vector<1x128xi1>
    %45 = vector.broadcast %44 : vector<1x128xi1> to vector<8x128xi1>
    %46 = vector.broadcast %cst_25 : f32 to vector<8x128xf32>
    %47 = arith.select %45, %43, %46 : vector<8x128xi1>, vector<8x128xf32>
    %48 = vector.extract_strided_slice %2 {offsets = [0, 2], sizes = [8, 1], strides = [1, 1]} : vector<8x9xf32> to vector<8x1xf32>
    %49 = vector.broadcast %48 : vector<8x1xf32> to vector<8x128xf32>
    %50 = arith.mulf %47, %49 : vector<8x128xf32>
    %51 = arith.addf %42, %50 : vector<8x128xf32>
    %c1_i32_26 = arith.constant 1 : i32
    %52 = tpu.dynamic_rotate %25 by %c1_i32_26 dim 1 : vector<8x128xf32>, i32 -> vector<8x128xf32>
    %cst_27 = arith.constant 0.000000e+00 : f32
    %53 = vector.shape_cast %22 : vector<1x128xi1> to vector<1x128xi1>
    %54 = vector.broadcast %53 : vector<1x128xi1> to vector<8x128xi1>
    %55 = vector.broadcast %cst_27 : f32 to vector<8x128xf32>
    %56 = arith.select %54, %52, %55 : vector<8x128xi1>, vector<8x128xf32>
    %57 = vector.extract_strided_slice %2 {offsets = [0, 3], sizes = [8, 1], strides = [1, 1]} : vector<8x9xf32> to vector<8x1xf32>
    %58 = vector.broadcast %57 : vector<8x1xf32> to vector<8x128xf32>
    %59 = arith.mulf %56, %58 : vector<8x128xf32>
    %60 = arith.addf %51, %59 : vector<8x128xf32>
    %61 = vector.extract_strided_slice %2 {offsets = [0, 4], sizes = [8, 1], strides = [1, 1]} : vector<8x9xf32> to vector<8x1xf32>
    %62 = vector.broadcast %61 : vector<8x1xf32> to vector<8x128xf32>
    %63 = arith.mulf %25, %62 : vector<8x128xf32>
    %64 = arith.addf %60, %63 : vector<8x128xf32>
    %c127_i32_28 = arith.constant 127 : i32
    %65 = tpu.dynamic_rotate %25 by %c127_i32_28 dim 1 : vector<8x128xf32>, i32 -> vector<8x128xf32>
    %cst_29 = arith.constant 0.000000e+00 : f32
    %66 = vector.shape_cast %24 : vector<1x128xi1> to vector<1x128xi1>
    %67 = vector.broadcast %66 : vector<1x128xi1> to vector<8x128xi1>
    %68 = vector.broadcast %cst_29 : f32 to vector<8x128xf32>
    %69 = arith.select %67, %65, %68 : vector<8x128xi1>, vector<8x128xf32>
    %70 = vector.extract_strided_slice %2 {offsets = [0, 5], sizes = [8, 1], strides = [1, 1]} : vector<8x9xf32> to vector<8x1xf32>
    %71 = vector.broadcast %70 : vector<8x1xf32> to vector<8x128xf32>
    %72 = arith.mulf %69, %71 : vector<8x128xf32>
    %73 = arith.addf %64, %72 : vector<8x128xf32>
    %c0_30 = arith.constant 0 : index
    %c32 = arith.constant 32 : index
    %74 = vector.load %arg11[%c0_30, %c32] : memref<8x160xf32, #tpu.memory_space<vmem>>, vector<8x128xf32>
    %c1_i32_31 = arith.constant 1 : i32
    %75 = tpu.dynamic_rotate %74 by %c1_i32_31 dim 1 : vector<8x128xf32>, i32 -> vector<8x128xf32>
    %cst_32 = arith.constant 0.000000e+00 : f32
    %76 = vector.shape_cast %22 : vector<1x128xi1> to vector<1x128xi1>
    %77 = vector.broadcast %76 : vector<1x128xi1> to vector<8x128xi1>
    %78 = vector.broadcast %cst_32 : f32 to vector<8x128xf32>
    %79 = arith.select %77, %75, %78 : vector<8x128xi1>, vector<8x128xf32>
    %80 = vector.extract_strided_slice %2 {offsets = [0, 6], sizes = [8, 1], strides = [1, 1]} : vector<8x9xf32> to vector<8x1xf32>
    %81 = vector.broadcast %80 : vector<8x1xf32> to vector<8x128xf32>
    %82 = arith.mulf %79, %81 : vector<8x128xf32>
    %83 = arith.addf %73, %82 : vector<8x128xf32>
    %84 = vector.extract_strided_slice %2 {offsets = [0, 7], sizes = [8, 1], strides = [1, 1]} : vector<8x9xf32> to vector<8x1xf32>
    %85 = vector.broadcast %84 : vector<8x1xf32> to vector<8x128xf32>
    %86 = arith.mulf %74, %85 : vector<8x128xf32>
    %87 = arith.addf %83, %86 : vector<8x128xf32>
    %c127_i32_33 = arith.constant 127 : i32
    %88 = tpu.dynamic_rotate %74 by %c127_i32_33 dim 1 : vector<8x128xf32>, i32 -> vector<8x128xf32>
    %cst_34 = arith.constant 0.000000e+00 : f32
    %89 = vector.shape_cast %24 : vector<1x128xi1> to vector<1x128xi1>
    %90 = vector.broadcast %89 : vector<1x128xi1> to vector<8x128xi1>
    %91 = vector.broadcast %cst_34 : f32 to vector<8x128xf32>
    %92 = arith.select %90, %88, %91 : vector<8x128xi1>, vector<8x128xf32>
    %93 = vector.extract_strided_slice %2 {offsets = [0, 8], sizes = [8, 1], strides = [1, 1]} : vector<8x9xf32> to vector<8x1xf32>
    %94 = vector.broadcast %93 : vector<8x1xf32> to vector<8x128xf32>
    %95 = arith.mulf %92, %94 : vector<8x128xf32>
    %96 = arith.addf %87, %95 : vector<8x128xf32>
    %cst_35 = arith.constant 0.000000e+00 : f32
    %97 = vector.broadcast %cst_35 : f32 to vector<8x128xf32>
    %98 = arith.cmpf oge, %96, %97 : vector<8x128xf32>
    %cst_36 = arith.constant 0.00999999977 : f32
    %99 = vector.broadcast %cst_36 : f32 to vector<8x128xf32>
    %100 = arith.mulf %99, %96 : vector<8x128xf32>
    %101 = arith.select %98, %96, %100 : vector<8x128xi1>, vector<8x128xf32>
    %c0_37 = arith.constant 0 : index
    %c0_38 = arith.constant 0 : index
    %102 = vector.load %arg8[%c0_37, %c0_38] : memref<4x8xf32, #tpu.memory_space<vmem>>, vector<4x8xf32>
    %cst_39 = arith.constant dense<0.000000e+00> : vector<4x128xf32>
    %103 = tpu.matmul %102, %101, %cst_39 {dimension_numbers = #tpu.dot_dimension_numbers<[1], [0], [0], [1], [0, 0, 1, 1], [], []>} : vector<4x8xf32>, vector<8x128xf32>, vector<4x128xf32> -> vector<4x128xf32>
    %c0_40 = arith.constant 0 : index
    %c0_41 = arith.constant 0 : index
    %104 = vector.load %arg9[%c0_40, %c0_41] : memref<4x1xf32, #tpu.memory_space<vmem>>, vector<4x1xf32>
    %105 = vector.broadcast %104 : vector<4x1xf32> to vector<4x128xf32>
    %106 = arith.addf %103, %105 : vector<4x128xf32>
    %107 = vector.extract_strided_slice %1 {offsets = [0, 16], sizes = [4, 128], strides = [1, 1]} : vector<4x160xf32> to vector<4x128xf32>
    %108 = arith.addf %106, %107 : vector<4x128xf32>
    %c0_42 = arith.constant 0 : index
    %c0_43 = arith.constant 0 : index
    %c0_44 = arith.constant 0 : index
    %109 = vector.load %arg10[%c0_42, %c0_43, %c0_44] : memref<1x4x128xf32, #tpu.memory_space<vmem>>, vector<1x4x128xf32>
    %110 = vector.shape_cast %109 : vector<1x4x128xf32> to vector<4x128xf32>
    %111 = vector.shape_cast %108 : vector<4x128xf32> to vector<1x4x128xf32>
    tpu.vector_store %arg10[%c0_42, %c0_43, %c0_44], %111 {strides = array<i32>} : memref<1x4x128xf32, #tpu.memory_space<vmem>>, vector<1x4x128xf32>,
    return
  }
  func.func @transform_0(%arg0: i32, %arg1: i32) -> (i32, i32, i32, i32) {
    %c0_i32 = arith.constant 0 : i32
    %c0_i32_0 = arith.constant 0 : i32
    %c0_i32_1 = arith.constant 0 : i32
    return %arg0, %arg1, %c0_i32, %c0_i32_0 : i32, i32, i32, i32
  }
  func.func @transform_1(%arg0: i32, %arg1: i32) -> (i32, i32) {
    %c0_i32 = arith.constant 0 : i32
    %c0_i32_0 = arith.constant 0 : i32
    %c0_i32_1 = arith.constant 0 : i32
    return %c0_i32, %c0_i32_0 : i32, i32
  }
  func.func @transform_2(%arg0: i32, %arg1: i32) -> (i32, i32) {
    %c0_i32 = arith.constant 0 : i32
    %c0_i32_0 = arith.constant 0 : i32
    %c0_i32_1 = arith.constant 0 : i32
    return %c0_i32, %c0_i32_0 : i32, i32
  }
  func.func @transform_3(%arg0: i32, %arg1: i32) -> (i32, i32) {
    %c0_i32 = arith.constant 0 : i32
    %c0_i32_0 = arith.constant 0 : i32
    %c0_i32_1 = arith.constant 0 : i32
    return %c0_i32, %c0_i32_0 : i32, i32
  }
  func.func @transform_4(%arg0: i32, %arg1: i32) -> (i32, i32) {
    %c0_i32 = arith.constant 0 : i32
    %c0_i32_0 = arith.constant 0 : i32
    %c0_i32_1 = arith.constant 0 : i32
    return %c0_i32, %c0_i32_0 : i32, i32
  }
  func.func @transform_5(%arg0: i32, %arg1: i32) -> (i32, i32) {
    %c0_i32 = arith.constant 0 : i32
    %c0_i32_0 = arith.constant 0 : i32
    %c0_i32_1 = arith.constant 0 : i32
    return %c0_i32, %c0_i32_0 : i32, i32
  }
  func.func @transform_6(%arg0: i32, %arg1: i32) -> (i32, i32) {
    %c0_i32 = arith.constant 0 : i32
    %c0_i32_0 = arith.constant 0 : i32
    %c0_i32_1 = arith.constant 0 : i32
    return %c0_i32, %c0_i32_0 : i32, i32
  }
  func.func @transform_7(%arg0: i32, %arg1: i32) -> (i32, i32) {
    %c0_i32 = arith.constant 0 : i32
    %c0_i32_0 = arith.constant 0 : i32
    %c0_i32_1 = arith.constant 0 : i32
    return %c0_i32, %c0_i32_0 : i32, i32
  }
  func.func @transform_8(%arg0: i32, %arg1: i32) -> (i32, i32, i32) {
    %c0_i32 = arith.constant 0 : i32
    %c0_i32_0 = arith.constant 0 : i32
    return %arg0, %c0_i32, %arg1 : i32, i32, i32
  }
}

</mosaic_0001>

<bundles_post_ra>
// kernel: tpu_custom_call.1
= control target key start
LH: loop header
LB: loop body
LE: loop exit
PB: predicated region body
PF: predicated region fallthrough
CT: control target
= control target key end

     0   :  { %s1340_s0 = inlined_call_operand.vmem [shape: f32[2,2,4,160], index: 0, kind: input, shape index: {}]   ;;  %s1341_s1 = inlined_call_operand.vmem [shape: s32[1,128], index: 1, kind: input, shape index: {}]   ;;  %s1342_s2 = inlined_call_operand.vmem [shape: f32[8,4], index: 2, kind: input, shape index: {}]   ;;  %s1343_s3 = inlined_call_operand.vmem [shape: f32[8,1], index: 3, kind: input, shape index: {}]   ;;  %s1344_s4 = inlined_call_operand.vmem [shape: f32[8,9], index: 4, kind: input, shape index: {}]   ;;  %s1345_s5 = inlined_call_operand.vmem [shape: f32[8,1], index: 5, kind: input, shape index: {}]   ;;  %s1346_s6 = inlined_call_operand.vmem [shape: f32[4,8], index: 6, kind: input, shape index: {}]   ;;  %s1347_s7 = inlined_call_operand.vmem [shape: f32[4,1], index: 7, kind: input, shape index: {}]   ;;  %s1348_s8 = inlined_call_operand.hbm [shape: f32[2,4,256], index: 8, kind: output, shape index: {}]  }
   0x1   :  { %1352 = sst [smem:[#allocation8_spill]] %s1344_s4 }
   0x2   :  { %13 = vsyncpa [#allocation4], 0 }
   0x3   :  { %15 = vsyncpa [#allocation4 + $0x1], 0  ;;  %s1095_s27 = smov 0   ;;  %s1097_s28 = smov 0  }
   0x4   :  { %s1099_s29 = smov 0   ;;  %s1101_s30 = smov 0  }
   0x5   :  { %s1103_s9 = smov 0   ;;  %s1105_s10 = smov 0  }
   0x6   :  { %s1107_s11 = smov 0   ;;  %s1109_s12 = smov 0  }
   0x7 LB: > { %s807_s13 = sadd.s32 4294967295, %s1029_s12   ;;  %s808_s14 = sadd.s32 4294967294, %s1029_s12   ;;  %s1029_s12 = sphi %s1109_s12, %s21_s12   ;;  %s1025_s11 = sphi %s1107_s11, %s1367_s11   ;;  %s1021_s10 = sphi %s1105_s10, %s1366_s10   ;;  %s1017_s9 = sphi %s1103_s9, %s1365_s9   ;;  %s1013_s30 = sphi %s1101_s30, %s1364_s30   ;;  %s1009_s29 = sphi %s1099_s29, %s1363_s29   ;;  %s1005_s28 = sphi %s1097_s28, %s1362_s28   ;;  %s1001_s27 = sphi %s1095_s27, %s1361_s27  }
   0x8   : > { %s30_s15 = sadd.s32 1, %s1021_s10  ;;  %s33_s16 = sadd.s32 1, %s1025_s11 }
   0x9   : > { %p31_p0 = scmp.ge.s32.totalorder %s30_s15, 2  ;;  %p227_p1 = scmp.ne.s32.totalorder %s1009_s29, %s1005_s28 }
   0xa   : > { %p228_p2 = scmp.eq.s32.totalorder %s807_s13, 3  ;;  %p233_p5 = scmp.ne.s32.totalorder %s1005_s28, %s1001_s27 }
   0xb   : > { %s1369_s15 = smov (%p31_p0, %s30_s15), 0  ;;  %s1371_s16 = smov (!%p31_p0, %s33_s16), %s1025_s11 }
   0xc   : > { %1353 = sst [smem:[#allocation6_spill]] %s1369_s15  ;;  %s213_s17 = ssub.s32 %s1021_s10, %s1369_s15 }
   0xd   : > { %p1146_p3 = por %p228_p2, %p227_p1  ;;  %p35_p4 = scmp.ge.s32.totalorder %s1371_s16, 2 }
   0xe   : > { %p234_p6 = scmp.eq.s32.totalorder %s808_s14, 3  ;;  %p811_p7 = scmp.ge.s32.totalorder %s1029_s12, 1 }
   0xf   : > { %s1373_s16 = smov (%p35_p4, %s1371_s16), 0  ;;  %p285_p9 = scmp.lt.s32.totalorder %s1029_s12, 5 }
  0x10   : > { %1355 = sst [smem:[#allocation7_spill]] %s1373_s16  ;;  %p1155_p8 = por %p234_p6, %p233_p5 }
  0x11   : > { %s212_s20 = ssub.s32 %s1025_s11, %s1373_s16  ;;  %s217_s21 = sadd.s32 1, %s1009_s29 }
  0x12   : > { %s214_s22 = sor.u32 %s213_s17, %s212_s20  ;;  %p286_p10 = pnand %p811_p7, %p285_p9 }
  0x13   : > { %p215_p11 = scmp.eq.s32.totalorder %s214_s22, 0  ;;  %s1349_s24 = sand.u32 (!%p286_p10), 1, %s1005_s28   ;;  %v1031_v1 = vmov (!%p286_p10), 0.0   ;;  %v335_v2 = vld [vmem:[%s1343_s3] sm:$0xff] (!%p286_p10)  ;;  %v1032_v3 = vmov (!%p286_p10), 0   ;;  %vm347_vm0 = vcmask (!%p286_p10), 1043456  }
  0x14   : > { %289 = sbr.rel (%p286_p10) target bundleno = 1002 (0x3ea), region = 52  ;;  %p323_p12 = scmp.lt.s32.totalorder (!%p286_p10), %s1017_s9, 1  ;;  %416 = vmatprep.mubr.f32.mxu0 (!%p286_p10), %v1031_v1  ;;  %923 = vset.pattern.permute.xlu0 (!%p286_p10), %v1032_v3  ;;  %v334_v6 = vld [vmem:[%s1342_s2] sm:$0xff] (!%p286_p10)  ;;  %vm343_vm1 = vcmask (!%p286_p10), 31744   ;;  %vm430_vm4 = vcmask (!%p286_p10), 261120  }
  0x15   : > { %s1164_s23 = scalar_select %p215_p11, %s1009_s29, %s217_s21  }
  0x16   : > { %s1357_s4 = sld [smem:[#allocation8_spill]] (!%p286_p10)  ;;  %s1175_s13 = sshll.u32 (!%p286_p10), %s1349_s24, 2  ;;  %338 = vperm.xlu0 (!%p286_p10), %923, %v335_v2  }
  0x17   : > { %p325_p13 = scmp.lt.s32.totalorder (!%p286_p10), %s1013_s30, 1  ;;  %p819_p0 = scmp.ne.s32.totalorder (!%p286_p10), %s1013_s30, 0 }
  0x1b   : > { %s324_s20 = scalar_select %p323_p12, %s1017_s9, 1 }
  0x1c   : > { %v1171_v0 = vld [vmem:[%s1357_s4] sm:$0xff]  ;;  %s326_s21 = scalar_select %p325_p13, %s1013_s30, 1 }
  0x1d   : > { %s814_s22 = sshll.u32 %s324_s20, 2  ;;  %vm436_vm5 = vcmask (!%p819_p0), 130048   ;;  %v1033_v16 = vmov (!%p819_p0), 0.0  }
  0x1e   : > { %s813_s25 = sshll.u32 %s326_s21, 1 }
  0x1f   : > { %s329_s26 = sadd.s32 %s814_s22, %s813_s25 }
  0x20   : > { %s815_s4 = sshll.u32 %s329_s26, 2 }
  0x21   : > { %s331_s15 = scalar_lea.vmem %s1340_s0, %s815_s4  ;;  %s322_s4 = scalar_lea.vmem [#allocation3], %s1175_s13 }
  0x22   : > { %v1188_v4 = vld [vmem:[%s331_s15] sm:$0xff] }
  0x23   : > { %v1192_v5 = vcombine.high %v1188_v4, %v1188_v4 }
  0x25   : > { %816 = vmatprep.subr.msk.mxu0 %vm347_vm0, %v1192_v5 }
  0x26   : > { %817 = vmatpush1.msk.msra.mxu0 %vm347_vm0, %v1188_v4 }
  0x27   : > { %818 = vmatmul.mubr.msk.f32.vlgmr.msra.gmra.mrb[0].mxu0 %vm343_vm1, %v334_v6 }
  0x95   : > { %v339_v7 = vpop.permute.xlu0 %338 }
  0xfa   : > { %v418_v8 = vpop.f32.mrb[0].mxu0 }
  0xfb   : > { %v419_v9 = vadd.f32 %v418_v8, %v339_v7  ;;  %v420_v10 = vpop.f32.mrb[1].mxu0  ;;  %435 = sbr.rel (%p819_p0) target bundleno = 259 (0x103), region = 56 }
  0xfc   : > { %v421_v11 = vadd.f32 %v420_v10, %v339_v7 }
  0xfd   : > { %vm423_vm2 = vcmp.ge.f32.partialorder %v419_v9, 0.0  ;;  %v425_v12 = vmul.f32 0.01, %v419_v9 }
  0xfe   : > { %vm424_vm3 = vcmp.ge.f32.partialorder %v421_v11, 0.0  ;;  %v426_v13 = vmul.f32 0.01, %v421_v11 }
  0xff   : > { %v427_v14 = vsel %vm423_vm2, %v419_v9, %v425_v12 }
 0x100   : > { %429 = vst [vmem:[#allocation2] sm:$0xff] %v427_v14  ;;  %v428_v15 = vsel %vm424_vm3, %v421_v11, %v426_v13 }
 0x101   : > { %431 = vst.msk [vmem:[#allocation2 + $0x8] sm:$0xff] %vm430_vm4, %v428_v15 }
 0x102   : > { %437 = vst.msk [vmem:[#allocation2] sm:$0xff] %vm436_vm5, %v1033_v16 }
 0x103 PF: > { %p820_p1 = scmp.ne.s32.totalorder %s1013_s30, 1 }
 0x104   : > { %vm442_vm6 = vcmask (!%p820_p1), 261248   ;;  %v1034_v17 = vmov (!%p820_p1), 0.0  }
 0x105   : > { %441 = sbr.rel (%p820_p1) target bundleno = 268 (0x10c), region = 60  ;;  %443 = vst.msk [vmem:[#allocation2 + $0x8] sm:$0xff] (!%p820_p1), %vm442_vm6, %v1034_v17 }
 0x10c PF: > { %v1202_v18 = vld [vmem:[#allocation2] sm:$0xff]  ;;  %925 = vset.pattern.permute.xlu0 %v1032_v3  ;;  %829 = vmatprep.subr.mxu1 %v1031_v1  ;;  %s1035_s15 = smov 112   ;;  %s1036_s16 = smov 96   ;;  %v1209_v19 = vld [vmem:[#allocation2 + $0x8] sm:$0xff]  ;;  %v1037_v20 = vmov 1   ;;  %v1038_v21 = vmov 2   ;;  %v461_v31 = vlaneseq }
 0x10d   : > { %512 = vrot.lane.b32.xlu0 %v1202_v18, %s1035_s15  ;;  %555 = vrot.lane.b32.xlu1 %v1202_v18, %s1036_s16  ;;  %s1039_s24 = smov 1   ;;  %v1040_v22 = vmov 7   ;;  %s1041_s20 = smov 127   ;;  %v1042_v23 = vmov 3   ;;  %v1043_v24 = vmov 5   ;;  %v1044_v25 = vmov 6  }
 0x10e   : > { %926 = vset.pattern.permute.xlu1 %v1037_v20  ;;  %v1045_v26 = vmov 8   ;;  %vm516_vm7 = vcmask 916480   ;;  %vm559_vm8 = vcmask 785408   ;;  %v444_v33 = vld [vmem:[%s1341_s1] sm:$0x1]  ;;  %v462_v35 = vshrl.u32 %v461_v31, 7 }
 0x10f   : > { %vm445_vm9 = vcmp.ge.s32.totalorder %v444_v33, 1  ;;  %v1046_v36 = vmov 4   ;;  %v449_v37 = vld [vmem:[%s1345_s5] sm:$0xff]  ;;  %vm446_vm10 = vcmp.lt.s32.totalorder %v444_v33, 15  ;;  %s1047_s14 = smov 16   ;;  %vm1048_vm13 = vmmov 0  }
 0x110   : > { %v463_v38 = vsub.s32 0, %v462_v35  ;;  %v460_v39 = vsel %vm445_vm9, 1, %v1032_v3  ;;  %v492_v41 = vsel %vm446_vm10, 1, %v1032_v3  ;;  %831 = vmatprep.mubr.msk.f32.mxu1 %vm1048_vm13, %v1031_v1  ;;  %vm628_vm0 = vcmask 64512   ;;  %s823_s21 = sshll.u32 %s1017_s9, 1  ;;  %s726_s25 = sshll.u32 %s322_s4, 4  ;;  %s1285_s25 = int_to_ptr.vmem [resolvable:$true] %s726_s25 }
 0x111   : > { %514 = vrot.lane.b32.xlu0 %v1209_v19, %s1035_s15  ;;  %557 = vrot.lane.b32.xlu1 %v1209_v19, %s1036_s16  ;;  %s935_s16 = scalar_lea.vmem %s1285_s25, 64 }
 0x112   : > { %v464_v40 = vrot.slane %v460_v39, %v463_v38  ;;  %v496_v45 = vrot.slane %v492_v41, %v463_v38  ;;  %p936_p2 = scmp.ne.s32.totalorder %s1285_s25, %s935_s16 }
 0x114   : > { %vm465_vm11 = vcmp.eq.s32.totalorder %v464_v40, 1  ;;  %vm497_vm12 = vcmp.eq.s32.totalorder %v496_v45, 1  ;;  %p937_p4 = pnand %p936_p2, %p1146_p3 }
 0x115   : > { %480 = vperm.xlu1 %926, %v1171_v0   ;;  %469 = vperm.xlu0 %925, %v1171_v0  }
 0x116   : > { %p938_p5 = pneg %p937_p4 }
 0x119   : > { %927 = vset.pattern.permute.xlu1 %v1038_v21  ;;  %458 = vrot.lane.b32.xlu0 %v1202_v18, %s1039_s24 }
 0x11a   : > { %500 = vperm.xlu1 %927, %v1171_v0   ;;  %931 = vset.pattern.permute.xlu0 %v1040_v22 }
 0x11d   : > { %490 = vrot.lane.b32.xlu0 %v1202_v18, %s1041_s20 }
 0x11e   : > { %928 = vset.pattern.permute.xlu1 %v1042_v23 }
 0x11f   : > { %523 = vperm.xlu1 %928, %v1171_v0  }
 0x123   : > { %929 = vset.pattern.permute.xlu1 %v1043_v24 }
 0x124   : > { %545 = vperm.xlu1 %929, %v1171_v0  }
 0x128   : > { %930 = vset.pattern.permute.xlu1 %v1044_v25 }
 0x129   : > { %566 = vperm.xlu1 %930, %v1171_v0  }
 0x12d   : > { %932 = vset.pattern.permute.xlu1 %v1045_v26 }
 0x17f   : > { %v513_v27 = vpop.permute.xlu0 %512  ;;  %v556_v28 = vpop.permute.xlu1 %555 }
 0x183   : > { %v515_v29 = vpop.permute.xlu0 %514  ;;  %v558_v32 = vpop.permute.xlu1 %557 }
 0x184   : > { %v517_v30 = vsel %vm516_vm7, %v513_v27, %v515_v29  ;;  %v560_v34 = vsel %vm559_vm8, %v556_v28, %v558_v32 }
 0x185   : > { %541 = vrot.lane.b32.xlu1 %v517_v30, %s1041_s20  ;;  %519 = vrot.lane.b32.xlu0 %v517_v30, %s1039_s24 }
 0x189   : > { %597 = vperm.xlu1 %932, %v1171_v0   ;;  %577 = vperm.xlu0 %931, %v1171_v0  }
 0x18d   : > { %593 = vrot.lane.b32.xlu1 %v560_v34, %s1041_s20  ;;  %562 = vrot.lane.b32.xlu0 %v560_v34, %s1039_s24  ;;  %s1049_s24 = smov [#allocation3]  }
 0x18e   : > { %934 = vset.pattern.permute.xlu1 %v1046_v36  ;;  %933 = vset.pattern.permute.xlu0 %v1032_v3  ;;  %s939_s20 = sshll.u32 %s1049_s24, 4  ;;  %s940_s20 = int_to_ptr.vmem [resolvable:$false] %s939_s20 }
 0x18f   : > { %p942_p6 = scmp.lt.s32.totalorder %s1285_s25, %s940_s20 }
 0x191   : > { %534 = vperm.xlu1 %934, %v1171_v0   ;;  %452 = vperm.xlu0 %933, %v449_v37  }
 0x194   : > { %v481_v42 = vpop.permute.xlu1 %480  ;;  %v470_v43 = vpop.permute.xlu0 %469 }
 0x195   : > { %v483_v44 = vmul.f32 %v481_v42, %v1202_v18 }
 0x197   : > { %485 = vrot.lane.b32.xlu0 %v483_v44, %s1047_s14 }
 0x198   : > { %v459_v46 = vpop.permute.xlu0 %458 }
 0x199   : > { %v466_v47 = vsel %vm465_vm11, %v459_v46, 0.0  ;;  %v501_v50 = vpop.permute.xlu1 %500 }
 0x19a   : > { %v472_v48 = vmul.f32 %v470_v43, %v466_v47 }
 0x19c   : > { %v491_v49 = vpop.permute.xlu0 %490  ;;  %474 = vrot.lane.b32.xlu1 %v472_v48, %s1047_s14  ;;  %v614_v48 = vld [vmem:[%s1347_s7] sm:$0xf] }
 0x19d   : > { %v498_v51 = vsel %vm497_vm12, %v491_v49, 0.0 }
 0x19e   : > { %v503_v52 = vmul.f32 %v501_v50, %v498_v51  ;;  %v524_v53 = vpop.permute.xlu1 %523  ;;  %v613_v51 = vld [vmem:[%s1346_s6] sm:$0xf] }
 0x1a0   : > { %505 = vrot.lane.b32.xlu1 %v503_v52, %s1047_s14 }
 0x1a3   : > { %v546_v54 = vpop.permute.xlu1 %545 }
 0x1a8   : > { %v567_v55 = vpop.permute.xlu1 %566 }
 0x1f7   : > { %v542_v56 = vpop.permute.xlu1 %541  ;;  %v520_v57 = vpop.permute.xlu0 %519 }
 0x1f8   : > { %v543_v58 = vsel %vm497_vm12, %v542_v56, 0.0  ;;  %v521_v59 = vsel %vm465_vm11, %v520_v57, 0.0 }
 0x1f9   : > { %v548_v60 = vmul.f32 %v546_v54, %v543_v58  ;;  %v526_v61 = vmul.f32 %v524_v53, %v521_v59 }
 0x1fb   : > { %528 = vrot.lane.b32.xlu0 %v526_v61, %s1047_s14  ;;  %550 = vrot.lane.b32.xlu1 %v548_v60, %s1047_s14 }
 0x208   : > { %v598_v62 = vpop.permute.xlu1 %597  ;;  %v578_v63 = vpop.permute.xlu0 %577 }
 0x209   : > { %v580_v0 = vmul.f32 %v578_v63, %v1202_v18  ;;  %v581_v10 = vmul.f32 %v578_v63, %v1209_v19 }
 0x20b   : > { %584 = vrot.lane.b32.xlu1 %v580_v0, %s1035_s15 }
 0x20c   : > { %v594_v2 = vpop.permute.xlu1 %593  ;;  %v563_v3 = vpop.permute.xlu0 %562 }
 0x20d   : > { %v595_v6 = vsel %vm497_vm12, %v594_v2, 0.0  ;;  %v564_v7 = vsel %vm465_vm11, %v563_v3, 0.0 }
 0x20e   : > { %v600_v8 = vmul.f32 %v598_v62, %v595_v6  ;;  %v569_v9 = vmul.f32 %v567_v55, %v564_v7 }
 0x210   : > { %571 = vrot.lane.b32.xlu0 %v569_v9, %s1047_s14  ;;  %602 = vrot.lane.b32.xlu1 %v600_v8, %s1047_s14  ;;  %v535_v11 = vpop.permute.xlu1 %534  ;;  %v453_v12 = vpop.permute.xlu0 %452 }
 0x211   : > { %v456_v13 = vadd.f32 %v453_v12, %v1209_v19  ;;  %v455_v14 = vadd.f32 %v453_v12, %v1202_v18  ;;  %v538_v27 = vmul.f32 %v535_v11, %v1209_v19  ;;  %v537_v29 = vmul.f32 %v535_v11, %v1202_v18 }
 0x214   : > { %586 = vrot.lane.b32.xlu0 %v581_v10, %s1035_s15  ;;  %v475_v15 = vpop.permute.xlu1 %474  ;;  %v486_v20 = vpop.permute.xlu0 %485 }
 0x215   : > { %v478_v16 = vadd.f32 %v475_v15, %v456_v13  ;;  %v477_v17 = vadd.f32 %v475_v15, %v455_v14 }
 0x217   : > { %v489_v21 = vadd.f32 %v486_v20, %v478_v16  ;;  %v488_v22 = vadd.f32 %v486_v20, %v477_v17 }
 0x218   : > { %v506_v23 = vpop.permute.xlu1 %505 }
 0x219   : > { %v509_v25 = vadd.f32 %v506_v23, %v489_v21  ;;  %v508_v26 = vadd.f32 %v506_v23, %v488_v22 }
 0x26d   : > { %v529_v24 = vpop.permute.xlu0 %528  ;;  %v551_v31 = vpop.permute.xlu1 %550 }
 0x26e   : > { %v532_v28 = vadd.f32 %v529_v24, %v509_v25  ;;  %v531_v30 = vadd.f32 %v529_v24, %v508_v26 }
 0x270   : > { %v540_v32 = vadd.f32 %v538_v27, %v532_v28  ;;  %v539_v33 = vadd.f32 %v537_v29, %v531_v30 }
 0x272   : > { %v554_v36 = vadd.f32 %v551_v31, %v540_v32  ;;  %v553_v37 = vadd.f32 %v551_v31, %v539_v33 }
 0x27d   : > { %v585_v34 = vpop.permute.xlu1 %584 }
 0x282   : > { %v572_v35 = vpop.permute.xlu0 %571  ;;  %v603_v42 = vpop.permute.xlu1 %602 }
 0x283   : > { %v575_v38 = vadd.f32 %v572_v35, %v554_v36  ;;  %v574_v39 = vadd.f32 %v572_v35, %v553_v37 }
 0x286   : > { %v587_v40 = vpop.permute.xlu0 %586 }
 0x287   : > { %v588_v41 = vsel %vm516_vm7, %v585_v34, %v587_v40  ;;  %v592_v19 = vadd.f32 %v587_v40, %v575_v38 }
 0x288   : > { %v591_v43 = vadd.f32 %v588_v41, %v574_v39 }
 0x289   : > { %v606_v18 = vadd.f32 %v603_v42, %v592_v19 }
 0x28a   : > { %v605_v44 = vadd.f32 %v603_v42, %v591_v43 }
 0x28b   : > { %vm608_vm14 = vcmp.ge.f32.partialorder %v606_v18, 0.0  ;;  %v610_v45 = vmul.f32 0.01, %v606_v18 }
 0x28c   : > { %vm607_vm15 = vcmp.ge.f32.partialorder %v605_v44, 0.0  ;;  %v609_v46 = vmul.f32 0.01, %v605_v44 }
 0x28d   : > { %v612_v47 = vsel %vm608_vm14, %v606_v18, %v610_v45 }
 0x28e   : > { %624 = vrot.lane.b32.xlu1 %v612_v47, %s1035_s15  ;;  %v611_v1 = vsel %vm607_vm15, %v605_v44, %v609_v46 }
 0x28f   : > { %622 = vrot.lane.b32.xlu0 %v611_v1, %s1035_s15 }
 0x292   : > { %702 = vrot.lane.b32.xlu1 %v1188_v4, %s1035_s15 }
 0x293   : > { %617 = vperm.xlu0 %933, %v614_v48  }
 0x297   : > { %704 = vrot.lane.b32.xlu0 %v1192_v5, %s1035_s15  ;;  %s722_s15 = sadd.s32 %s1013_s30, %s823_s21  ;;  %s1358_s30 = sand.u32 1, %s1005_s28  }
 0x298   : > { %s824_s22 = sshll.u32 %s722_s15, 6  ;;  %s711_s9 = scalar_lea.sflag [#allocation4], %s1358_s30 }
 0x299   : > { %s1283_s17 = scalar_lea.hbm %s1348_s8, %s824_s22  ;;  %s941_s21 = scalar_lea.vmem %s940_s20, 128 }
 0x29a   : > { %p943_p7 = scmp.lt.s32.totalorder %s941_s21, %s935_s16 }
 0x29c   : > { %p944_p9 = por %p943_p7, %p942_p6 }
 0x29e   : > { %p945_p10 = pnand %p944_p9, %p938_p5 }
 0x300   : > { %v625_v49 = vpop.permute.xlu1 %624 }
 0x301   : > { %v623_v50 = vpop.permute.xlu0 %622 }
 0x302   : > { %v626_v52 = vsel %vm516_vm7, %v623_v50, %v625_v49 }
 0x303   : > { %830 = vmatpush3.msra.mxu1 %v626_v52 }
 0x304   : > { %832 = vmatmul.mubr.msk.f32.vlgmr.msra.gmra.mrb[0].mxu1 %vm628_vm0, %v613_v51  ;;  %v703_v4 = vpop.permute.xlu1 %702 }
 0x312   : > { %v618_v53 = vpop.permute.xlu0 %617 }
 0x316   : > { %v705_v54 = vpop.permute.xlu0 %704 }
 0x317   : > { %v706_v55 = vsel %vm516_vm7, %v703_v4, %v705_v54 }
 0x3d7   : > { %v698_v5 = vpop.f32.mrb[0].mxu1 }
 0x3d8   : > { %v699_v56 = vadd.f32 %v698_v5, %v618_v53  ;;  %v833_v57 = vpop.f32.mrb[1].mxu1 }
 0x3da   : > { %v708_v58 = vadd.f32 %v706_v55, %v699_v56 }
 0x3dc   : > { %709 = vst [vmem:[%s322_s4] sm:$0xf] %v708_v58 }
 0x3dd   : > { %948 = shalt.err (!%p945_p10)
}
 0x3de   : > { %s949_s13 = scalar_lea.hbm %s1283_s17, 64  ;;  %s953_s22 = scalar_lea.hbm %s1348_s8, 256 }
 0x3df   : > { %p950_p11 = scmp.ne.s32.totalorder %s1283_s17, %s949_s13  ;;  %p954_p0 = scmp.lt.u32.totalorder %s1283_s17, %s1348_s8 }
 0x3e0   : > { %p955_p1 = scmp.lt.u32.totalorder %s953_s22, %s949_s13  ;;  %p957_p4 = scmp.lt.u32.totalorder %s949_s13, %s1283_s17 }
 0x3e1   : > { %p951_p12 = pnand %p950_p11, %p1146_p3 }
 0x3e2   : > { %p956_p2 = por %p955_p1, %p954_p0 }
 0x3e3   : > { %p952_p13 = pneg %p951_p12 }
 0x3e4   : > { %p958_p5 = por %p957_p4, %p956_p2 }
 0x3e6   : > { %p959_p6 = pnand %p958_p5, %p952_p13 }
 0x3e8   : > { %962 = shalt.err (!%p959_p6)
}
 0x3e9   : > { %834 = dma.vmem_to_hbm [thread:$0]  (%p1146_p3), %s1285_s25, 64, %s1283_s17, %s711_s9  }
 0x3ea PF: > { %p840_p7 = scmp.ge.s32.totalorder %s1029_s12, 2  ;;  %s738_s30 = sand.u32 1, %s1001_s27  }
 0x3eb   : > { %s739_s16 = scalar_lea.sflag [#allocation4], %s738_s30 }
 0x3ec   : > { %p837_p9 = pnand %p840_p7, %p1155_p8 }
 0x3ee   : > { %996 = dma.done.wait (!%p837_p9), %s739_s16, 64  }
 0x3ef   : > { %998 = vsyncadd (!%p837_p9), %s739_s16, 4294967232  ;;  %s21_s12 = sadd.s32 1, %s1029_s12   ;;  %s1359_s18 = sld [smem:[#allocation6_spill]] }
 0x3f0   : > { %p18_p10 = scmp.ge.s32.totalorder %s21_s12, 6   ;;  %s1360_s25 = sld [smem:[#allocation7_spill]] }
 0x3f1   : > { %s1361_s27 = smov %s1005_s28  ;;  %s1362_s28 = smov %s1009_s29 }
 0x3f2   : > { %s1363_s29 = smov %s1164_s23  ;;  %s1364_s30 = smov %s1021_s10 }
 0x3f3   : > { %s1365_s9 = smov %s1025_s11  ;;  %20 = sbr.rel (!%p18_p10) target bundleno = 7 (0x7), region = 95 }
 0x3f5   : > { %s1366_s10 = smov %s1359_s18 }
 0x3f6   : > { %s1367_s11 = smov %s1360_s25 }
 0x3fa   :  { %744 = vsyncpa [#allocation4], 1 }
 0x3fb   :  { %746 = vsyncpa [#allocation4 + $0x1], 1 }

</bundles_post_ra>
